<compile_context>
chip_gen: v7x
topology: tpu7x:2x2x1
jax: 0.10.0
libtpu: 0.0.40
codegen_flags: <defaults>
</compile_context>

<pallas_src>
import jax
import jax.numpy as jnp
from jax.experimental import pallas as pl
from jax.experimental.pallas import tpu as pltpu

# ----------------------------- model constants ------------------------------
NUM_JOINTS = 24                      # SMPL: 1 root + 23 body joints
NUM_BODY_JOINTS = NUM_JOINTS - 1
NUM_VERTS = 256                      # synthetic mesh (real SMPL: 6890)
NUM_BETAS = 10
POSE_FEAT = NUM_BODY_JOINTS * 9      # 207
POSE_FEAT_PAD = 224                  # padded contraction dim (clean bf16 sublane packing)

PARENTS = [-1, 0, 0, 0, 1, 2, 3, 4, 5, 6, 7, 8, 9, 9, 9,
           12, 13, 14, 16, 17, 18, 19, 20, 21]

F32 = jnp.float32
WDT = jnp.bfloat16                   # storage dtype for the big posedirs matrix only
                                     # (shapedirs + lbs_weights kept f32 for accuracy)

VMEM_LIMIT = 32 * 1024 * 1024        # per-step working set is only a few MB; safe on v7x (64 MiB)


def _round_up(x, m):
    return ((x + m - 1) // m) * m


def _pick_batch_tile(b, cap=128):
    """Largest multiple-of-8 divisor of b (<= cap); else the whole batch (full dim)."""
    mult8 = [t for t in range(8, min(b, cap) + 1, 8) if b % t == 0]
    return mult8[-1] if mult8 else b


def _pick_vertex_tile(v, cap=1024):
    """Largest multiple-of-128 tile dividing v (v is pre-padded to a 128 multiple)."""
    best = v
    t = 128
    while t <= min(v, cap):
        if v % t == 0:
            best = t
        t += 128
    return best


# ------------------------------ fused Pallas kernel -------------------------
def _lbs_fused_kernel(xb_ref, xp_ref, ws_ref, wp_ref, vt_ref, a_ref, wl_ref, out_ref):
    """Fused shape-blend + pose-blend + skinning for one (vertex, batch) tile.

    xb:  (tb, NB)      f32   betas
    xp:  (tb, KP)      f32   pose feature (zero-padded), cast to bf16 for the MXU
    ws:  (3, NB, tv)   f32   planar shapedirs
    wp:  (3, KP, tv)   bf16  planar posedirs
    vt:  (3, 1, tv)    f32   planar v_template
    a:   (12, tb, J)   f32   first 3 rows of per-joint relative transforms
    wl:  (J, tv)       f32   transposed LBS blend weights
    out: (3, tb, tv)   f32   planar skinned vertices
    """
    tb = xb_ref.shape[0]
    j = wl_ref.shape[0]

    xb = xb_ref[...]
    xp = xp_ref[...].astype(WDT)

    # --- blend: three lane-dense v_posed coordinate slabs, kept in registers ---
    vx = (jnp.dot(xb, ws_ref[0], preferred_element_type=F32)
          + jnp.dot(xp, wp_ref[0], preferred_element_type=F32) + vt_ref[0])
    vy = (jnp.dot(xb, ws_ref[1], preferred_element_type=F32)
          + jnp.dot(xp, wp_ref[1], preferred_element_type=F32) + vt_ref[1])
    vz = (jnp.dot(xb, ws_ref[2], preferred_element_type=F32)
          + jnp.dot(xp, wp_ref[2], preferred_element_type=F32) + vt_ref[2])

    # --- per-vertex affine transforms: rows e*tb:(e+1)*tb hold element e ---
    a = a_ref[...].reshape(12 * tb, j)                              # (12*tb, J)
    t = jnp.dot(a, wl_ref[...], preferred_element_type=F32)        # (12*tb, tv)

    def r(e):                                                       # contiguous sublane slice
        return t[e * tb:(e + 1) * tb, :]

    # --- skinning + direct plane stores (no stack / relayout) ---
    out_ref[0, :, :] = r(0) * vx + r(1) * vy + r(2) * vz + r(3)
    out_ref[1, :, :] = r(4) * vx + r(5) * vy + r(6) * vz + r(7)
    out_ref[2, :, :] = r(8) * vx + r(9) * vy + r(10) * vz + r(11)


def lbs_fused_pallas(x_betas, x_pose, w_shape, w_pose, vt, a12, wl):
    """Fused blend + skinning. Grid = (vertex tiles, batch tiles), batch innermost."""
    B, NB = x_betas.shape
    KP = x_pose.shape[1]
    J, V = wl.shape
    tb = _pick_batch_tile(B)
    tv = _pick_vertex_tile(V)
    nv, nb = V // tv, B // tb
    grid = (nv, nb)   # batch = fastest axis -> weight blocks (index depends only on jv) reused

    flops = 2 * B * 3 * (NB + KP) * V + 2 * B * 12 * J * V + 18 * B * V
    bytes_accessed = (
        w_shape.size * 4 + w_pose.size * 2 + vt.size * 4 + wl.size * 4   # weights fetched once
        + nv * (x_betas.size * 4 + x_pose.size * 4 + a12.size * 4)       # per-batch data re-read per vertex tile
        + 3 * B * V * 4)                                                  # verts written once
    cost = pl.CostEstimate(flops=flops, transcendentals=0, bytes_accessed=bytes_accessed)

    return pl.pallas_call(
        _lbs_fused_kernel,
        out_shape=jax.ShapeDtypeStruct((3, B, V), F32),
        grid=grid,
        in_specs=[
            pl.BlockSpec((tb, NB), lambda jv, ib: (ib, 0)),
            pl.BlockSpec((tb, KP), lambda jv, ib: (ib, 0)),
            pl.BlockSpec((3, NB, tv), lambda jv, ib: (0, 0, jv)),
            pl.BlockSpec((3, KP, tv), lambda jv, ib: (0, 0, jv)),
            pl.BlockSpec((3, 1, tv), lambda jv, ib: (0, 0, jv)),
            pl.BlockSpec((12, tb, J), lambda jv, ib: (0, ib, 0)),
            pl.BlockSpec((J, tv), lambda jv, ib: (0, jv)),
        ],
        out_specs=pl.BlockSpec((3, tb, tv), lambda jv, ib: (0, ib, jv)),
        compiler_params=pltpu.CompilerParams(
            dimension_semantics=("parallel", "parallel"),
            vmem_limit_bytes=VMEM_LIMIT),
        cost_estimate=cost,
    )(x_betas, x_pose, w_shape, w_pose, vt, a12, wl)


# ---------------------- plain-JAX reference (for checking) ------------------
def _lbs_ref(x_betas, x_pose, w_shape, w_pose, vt, a12, wl):
    vp = (jnp.einsum('bk,ckv->cbv', x_betas, w_shape)
          + jnp.einsum('bk,ckv->cbv', x_pose.astype(WDT).astype(F32),
                       w_pose.astype(F32))
          + vt)                                                     # (3, B, V)
    t = jnp.einsum('ebj,jv->ebv', a12, wl)                          # (12, B, V)
    ox = t[0] * vp[0] + t[1] * vp[1] + t[2] * vp[2] + t[3]
    oy = t[4] * vp[0] + t[5] * vp[1] + t[6] * vp[2] + t[7]
    oz = t[8] * vp[0] + t[9] * vp[1] + t[10] * vp[2] + t[11]
    return jnp.stack([ox, oy, oz], axis=0)                          # (3, B, V)


# ------------------------------- plain-JAX glue ------------------------------
def batch_rodrigues(rot_vecs):
    """Angle-axis (N, 3) -> rotation matrices (N, 3, 3). Matches smplx."""
    angle = jnp.linalg.norm(rot_vecs + 1e-8, axis=1, keepdims=True)
    rot_dir = rot_vecs / angle
    cos = jnp.cos(angle)[:, :, None]
    sin = jnp.sin(angle)[:, :, None]
    rx, ry, rz = rot_dir[:, 0], rot_dir[:, 1], rot_dir[:, 2]
    zeros = jnp.zeros_like(rx)
    K = jnp.stack([zeros, -rz, ry,
                   rz, zeros, -rx,
                   -ry, rx, zeros], axis=1).reshape(-1, 3, 3)
    ident = jnp.eye(3, dtype=rot_vecs.dtype)[None]
    return ident + sin * K + (1.0 - cos) * jnp.matmul(K, K)


def batch_rigid_transform(rot_mats, joints, parents):
    """rot_mats (B,J,3,3), joints (B,J,3) -> posed joints (B,J,3), rel transforms (B,J,4,4)."""
    B, J = joints.shape[0], joints.shape[1]
    rel_joints = jnp.concatenate(
        [joints[:, :1], joints[:, 1:] - joints[:, jnp.array(parents[1:])]], axis=1)
    top = jnp.concatenate([rot_mats, rel_joints[..., None]], axis=-1)       # (B,J,3,4)
    bottom = jnp.broadcast_to(
        jnp.array([0.0, 0.0, 0.0, 1.0], dtype=joints.dtype), (B, J, 1, 4))
    transforms_mat = jnp.concatenate([top, bottom], axis=-2)                # (B,J,4,4)

    chain = [transforms_mat[:, 0]]
    for i in range(1, J):
        chain.append(jnp.matmul(chain[parents[i]], transforms_mat[:, i]))
    transforms = jnp.stack(chain, axis=1)                                   # (B,J,4,4)

    posed_joints = transforms[:, :, :3, 3]
    joints_homo = jnp.concatenate(
        [joints, jnp.zeros_like(joints[..., :1])], axis=-1)[..., None]      # (B,J,4,1)
    correction = jnp.matmul(transforms, joints_homo)                        # (B,J,4,1)
    correction = jnp.pad(correction, ((0, 0), (0, 0), (0, 0), (3, 0)))      # (B,J,4,4)
    rel_transforms = transforms - correction
    return posed_joints, rel_transforms


class SMPLLayerPallas:
    """Synthetic SMPL body model; forward() == fk(), LBS hot path fused in Pallas."""

    def __init__(self, num_betas=NUM_BETAS, seed=0):
        self.num_betas = num_betas
        k = jax.random.PRNGKey(seed)
        k1, k2, k3, k4, k5 = jax.random.split(k, 5)
        V, J, NB = NUM_VERTS, NUM_JOINTS, num_betas
        VP = _round_up(V, 128)               # pad vertices so all lane tiles are unmasked
        self.num_verts = V
        self.num_verts_pad = VP

        v_template = (jax.random.normal(k1, (V, 3)) * 0.1).astype(F32)
        shapedirs = (jax.random.normal(k2, (V, 3, NB)) * 0.01).astype(F32)

        def pad_v(x):   # zero-pad the trailing (vertex) axis to VP
            return jnp.pad(x, [(0, 0)] * (x.ndim - 1) + [(0, VP - V)])

        # Planar ("coordinate-major") layouts: coordinate leading, vertices on lanes.
        self.w_shape = pad_v(jnp.transpose(shapedirs, (1, 2, 0)))           # (3, NB, VP) f32
        # posedirs generated directly in planar layout (synthetic random weights);
        # zero-pad the contraction dim 207 -> 224; bf16 storage halves HBM bytes.
        posedirs = (jax.random.normal(k3, (3, POSE_FEAT, V)) * 0.01).astype(F32)
        posedirs = jnp.pad(posedirs,
                           ((0, 0), (0, POSE_FEAT_PAD - POSE_FEAT), (0, VP - V)))
        self.w_pose = posedirs.astype(WDT)                                  # (3, 224, VP) bf16
        self.v_template_planar = pad_v(v_template.T)[:, None, :]            # (3, 1, VP) f32

        jr = jax.random.uniform(k4, (J, V)).astype(F32)
        j_regressor = jr / jnp.sum(jr, axis=1, keepdims=True)
        # Algebraic elimination of the v_shaped round trip:
        #   J_rest = J_reg @ (v_template + shape_blend(betas)) = J_template + betas @ J_shapedirs
        self.j_template = j_regressor @ v_template                          # (J, 3)
        self.j_shapedirs = jnp.einsum('jv,vcb->bjc', j_regressor,
                                      shapedirs).reshape(NB, 3 * J)         # (NB, 3J)

        w = jax.random.uniform(k5, (V, J)).astype(F32)
        w = w / jnp.sum(w, axis=1, keepdims=True)
        self.lbs_weights_t = pad_v(w.T).astype(F32)                         # (J, VP) f32
        self.parents = PARENTS

    def fk(self, poses_body, betas, poses_root=None, trans=None,
           normalize_root=False, use_pallas=True):
        assert poses_body.shape[1] == NUM_BODY_JOINTS * 3
        B = poses_body.shape[0]
        V = self.num_verts
        if poses_root is None:
            poses_root = jnp.zeros((B, 3), dtype=poses_body.dtype)
        if trans is None:
            trans = jnp.zeros((B, 3), dtype=poses_body.dtype)
        if betas.ndim == 1:
            betas = betas[None, :]
        if betas.shape[0] == 1:
            betas = jnp.broadcast_to(betas, (B, betas.shape[1]))
        betas = betas[:, :self.num_betas].astype(F32)
        # TODO(synk): normalize_root path (aa2rot / inverse / rot2aa) not implemented.

        full_pose = jnp.concatenate([poses_root, poses_body], axis=1)       # (B, 24*3)
        rot_mats = batch_rodrigues(full_pose.reshape(-1, 3)).reshape(B, NUM_JOINTS, 3, 3)
        pose_feature = (rot_mats[:, 1:] - jnp.eye(3, dtype=F32)).reshape(B, POSE_FEAT)
        x_pose = jnp.pad(pose_feature, ((0, 0), (0, POSE_FEAT_PAD - POSE_FEAT)))

        # --- tiny joint regression (algebraically reduced; plain JAX) ---
        joints_rest = self.j_template[None] + \
            (betas @ self.j_shapedirs).reshape(B, NUM_JOINTS, 3)

        # --- tiny sequential kinematic chain (plain JAX) ---
        posed_joints, rel_transforms = batch_rigid_transform(
            rot_mats, joints_rest, self.parents)

        # First 3 rows of each 4x4 transform, element-major planar layout: (12, B, J).
        a12 = jnp.transpose(
            rel_transforms[:, :, :3, :].reshape(B, NUM_JOINTS, 12), (2, 0, 1))

        # --- Pallas: fused blend + skinning (planar, lane-dense, no v_posed HBM trip) ---
        lbs_fn = lbs_fused_pallas if use_pallas else _lbs_ref
        verts_planar = lbs_fn(betas, x_pose, self.w_shape, self.w_pose,
                              self.v_template_planar, a12, self.lbs_weights_t)  # (3, B, VP)
        verts = jnp.transpose(verts_planar[:, :, :V], (1, 2, 0))             # (B, V, 3)

        verts = verts + trans[:, None, :]
        joints = posed_joints + trans[:, None, :]
        return verts, joints

    def forward(self, *args, **kwargs):
        return self.fk(*args, **kwargs)


if __name__ == "__main__":
    key = jax.random.PRNGKey(0)
    kb, kbeta, kr, kt = jax.random.split(key, 4)
    B = 2
    poses_body = (jax.random.normal(kb, (B, NUM_BODY_JOINTS * 3)) * 0.2).astype(F32)
    betas = (jax.random.normal(kbeta, (B, NUM_BETAS)) * 0.5).astype(F32)
    poses_root = (jax.random.normal(kr, (B, 3)) * 0.2).astype(F32)
    trans = (jax.random.normal(kt, (B, 3)) * 0.1).astype(F32)

    layer = SMPLLayerPallas()
    verts, joints = layer.forward(poses_body, betas, poses_root=poses_root, trans=trans)
    verts = jax.block_until_ready(verts)
    joints = jax.block_until_ready(joints)

    # Plain-JAX reference (same math/layout, XLA dots instead of the Pallas kernel).
    verts_ref, joints_ref = layer.fk(poses_body, betas, poses_root=poses_root,
                                     trans=trans, use_pallas=False)
    verts_ref = jax.block_until_ready(verts_ref)
    joints_ref = jax.block_until_ready(joints_ref)

    assert verts.shape == (B, NUM_VERTS, 3) and joints.shape == (B, NUM_JOINTS, 3)
    assert bool(jnp.all(jnp.isfinite(verts))) and bool(jnp.all(jnp.isfinite(joints)))
    assert bool(jnp.allclose(verts, verts_ref, atol=1e-2, rtol=1e-2))
    assert bool(jnp.allclose(joints, joints_ref, atol=1e-2, rtol=1e-2))
    print("KERNEL_OK")
</pallas_src>

<mosaic_0001>
module attributes {stable_mosaic.version = 11 : i64} {
  func.func @_lbs_fused_kernel(%arg0: i32, %arg1: i32, %arg2: memref<2x10xf32, #tpu.memory_space<vmem>>, %arg3: memref<2x224xf32, #tpu.memory_space<vmem>>, %arg4: memref<3x10x256xf32, #tpu.memory_space<vmem>>, %arg5: memref<3x224x256xbf16, #tpu.memory_space<vmem>>, %arg6: memref<3x1x256xf32, #tpu.memory_space<vmem>>, %arg7: memref<12x2x24xf32, #tpu.memory_space<vmem>>, %arg8: memref<24x256xf32, #tpu.memory_space<vmem>>, %arg9: memref<3x2x256xf32, #tpu.memory_space<vmem>>) attributes {dimension_semantics = [#tpu.dimension_semantics<parallel>, #tpu.dimension_semantics<parallel>], iteration_bounds = array<i64: 1, 1>, scalar_prefetch = 0 : i64, scratch_operands = 0 : i64, tpu.core_type = #tpu.core_type<tc>, window_params = [{transform_indices = @transform_0, window_bounds = array<i64: 2, 10>}, {transform_indices = @transform_1, window_bounds = array<i64: 2, 224>}, {transform_indices = @transform_2, window_bounds = array<i64: 3, 10, 256>}, {transform_indices = @transform_3, window_bounds = array<i64: 3, 224, 256>}, {transform_indices = @transform_4, window_bounds = array<i64: 3, 1, 256>}, {transform_indices = @transform_5, window_bounds = array<i64: 12, 2, 24>}, {transform_indices = @transform_6, window_bounds = array<i64: 24, 256>}, {transform_indices = @transform_7, window_bounds = array<i64: 3, 2, 256>}]} {
    %c0 = arith.constant 0 : index
    %c0_0 = arith.constant 0 : index
    %0 = vector.load %arg2[%c0, %c0_0] : memref<2x10xf32, #tpu.memory_space<vmem>>, vector<2x10xf32>
    %c0_1 = arith.constant 0 : index
    %c0_2 = arith.constant 0 : index
    %1 = vector.load %arg3[%c0_1, %c0_2] : memref<2x224xf32, #tpu.memory_space<vmem>>, vector<2x224xf32>
    %2 = arith.truncf %1 : vector<2x224xf32> to vector<2x224xbf16>
    %c0_3 = arith.constant 0 : index
    %c0_4 = arith.constant 0 : index
    %c0_5 = arith.constant 0 : index
    %3 = vector.load %arg4[%c0_3, %c0_4, %c0_5] : memref<3x10x256xf32, #tpu.memory_space<vmem>>, vector<1x10x256xf32>
    %4 = vector.shape_cast %3 : vector<1x10x256xf32> to vector<10x256xf32>
    %cst = arith.constant dense<0.000000e+00> : vector<2x256xf32>
    %5 = tpu.matmul %0, %4, %cst {dimension_numbers = #tpu.dot_dimension_numbers<[1], [0], [0], [1], [0, 0, 1, 1], [], []>} : vector<2x10xf32>, vector<10x256xf32>, vector<2x256xf32> -> vector<2x256xf32>
    %c0_6 = arith.constant 0 : index
    %c0_7 = arith.constant 0 : index
    %c0_8 = arith.constant 0 : index
    %6 = vector.load %arg5[%c0_6, %c0_7, %c0_8] : memref<3x224x256xbf16, #tpu.memory_space<vmem>>, vector<1x224x256xbf16>
    %7 = vector.shape_cast %6 : vector<1x224x256xbf16> to vector<224x256xbf16>
    %cst_9 = arith.constant dense<0.000000e+00> : vector<2x256xf32>
    %8 = tpu.matmul %2, %7, %cst_9 {dimension_numbers = #tpu.dot_dimension_numbers<[1], [0], [0], [1], [0, 0, 1, 1], [], []>} : vector<2x224xbf16>, vector<224x256xbf16>, vector<2x256xf32> -> vector<2x256xf32>
    %9 = arith.addf %5, %8 : vector<2x256xf32>
    %c0_10 = arith.constant 0 : index
    %c0_11 = arith.constant 0 : index
    %c0_12 = arith.constant 0 : index
    %10 = vector.load %arg6[%c0_10, %c0_11, %c0_12] : memref<3x1x256xf32, #tpu.memory_space<vmem>>, vector<1x1x256xf32>
    %11 = vector.shape_cast %10 : vector<1x1x256xf32> to vector<1x256xf32>
    %12 = vector.broadcast %11 : vector<1x256xf32> to vector<2x256xf32>
    %13 = arith.addf %9, %12 : vector<2x256xf32>
    %c1 = arith.constant 1 : index
    %c0_13 = arith.constant 0 : index
    %c0_14 = arith.constant 0 : index
    %14 = vector.load %arg4[%c1, %c0_13, %c0_14] : memref<3x10x256xf32, #tpu.memory_space<vmem>>, vector<1x10x256xf32>
    %15 = vector.shape_cast %14 : vector<1x10x256xf32> to vector<10x256xf32>
    %cst_15 = arith.constant dense<0.000000e+00> : vector<2x256xf32>
    %16 = tpu.matmul %0, %15, %cst_15 {dimension_numbers = #tpu.dot_dimension_numbers<[1], [0], [0], [1], [0, 0, 1, 1], [], []>} : vector<2x10xf32>, vector<10x256xf32>, vector<2x256xf32> -> vector<2x256xf32>
    %c1_16 = arith.constant 1 : index
    %c0_17 = arith.constant 0 : index
    %c0_18 = arith.constant 0 : index
    %17 = vector.load %arg5[%c1_16, %c0_17, %c0_18] : memref<3x224x256xbf16, #tpu.memory_space<vmem>>, vector<1x224x256xbf16>
    %18 = vector.shape_cast %17 : vector<1x224x256xbf16> to vector<224x256xbf16>
    %cst_19 = arith.constant dense<0.000000e+00> : vector<2x256xf32>
    %19 = tpu.matmul %2, %18, %cst_19 {dimension_numbers = #tpu.dot_dimension_numbers<[1], [0], [0], [1], [0, 0, 1, 1], [], []>} : vector<2x224xbf16>, vector<224x256xbf16>, vector<2x256xf32> -> vector<2x256xf32>
    %20 = arith.addf %16, %19 : vector<2x256xf32>
    %c1_20 = arith.constant 1 : index
    %c0_21 = arith.constant 0 : index
    %c0_22 = arith.constant 0 : index
    %21 = vector.load %arg6[%c1_20, %c0_21, %c0_22] : memref<3x1x256xf32, #tpu.memory_space<vmem>>, vector<1x1x256xf32>
    %22 = vector.shape_cast %21 : vector<1x1x256xf32> to vector<1x256xf32>
    %23 = vector.broadcast %22 : vector<1x256xf32> to vector<2x256xf32>
    %24 = arith.addf %20, %23 : vector<2x256xf32>
    %c2 = arith.constant 2 : index
    %c0_23 = arith.constant 0 : index
    %c0_24 = arith.constant 0 : index
    %25 = vector.load %arg4[%c2, %c0_23, %c0_24] : memref<3x10x256xf32, #tpu.memory_space<vmem>>, vector<1x10x256xf32>
    %26 = vector.shape_cast %25 : vector<1x10x256xf32> to vector<10x256xf32>
    %cst_25 = arith.constant dense<0.000000e+00> : vector<2x256xf32>
    %27 = tpu.matmul %0, %26, %cst_25 {dimension_numbers = #tpu.dot_dimension_numbers<[1], [0], [0], [1], [0, 0, 1, 1], [], []>} : vector<2x10xf32>, vector<10x256xf32>, vector<2x256xf32> -> vector<2x256xf32>
    %c2_26 = arith.constant 2 : index
    %c0_27 = arith.constant 0 : index
    %c0_28 = arith.constant 0 : index
    %28 = vector.load %arg5[%c2_26, %c0_27, %c0_28] : memref<3x224x256xbf16, #tpu.memory_space<vmem>>, vector<1x224x256xbf16>
    %29 = vector.shape_cast %28 : vector<1x224x256xbf16> to vector<224x256xbf16>
    %cst_29 = arith.constant dense<0.000000e+00> : vector<2x256xf32>
    %30 = tpu.matmul %2, %29, %cst_29 {dimension_numbers = #tpu.dot_dimension_numbers<[1], [0], [0], [1], [0, 0, 1, 1], [], []>} : vector<2x224xbf16>, vector<224x256xbf16>, vector<2x256xf32> -> vector<2x256xf32>
    %31 = arith.addf %27, %30 : vector<2x256xf32>
    %c2_30 = arith.constant 2 : index
    %c0_31 = arith.constant 0 : index
    %c0_32 = arith.constant 0 : index
    %32 = vector.load %arg6[%c2_30, %c0_31, %c0_32] : memref<3x1x256xf32, #tpu.memory_space<vmem>>, vector<1x1x256xf32>
    %33 = vector.shape_cast %32 : vector<1x1x256xf32> to vector<1x256xf32>
    %34 = vector.broadcast %33 : vector<1x256xf32> to vector<2x256xf32>
    %35 = arith.addf %31, %34 : vector<2x256xf32>
    %c0_33 = arith.constant 0 : index
    %c0_34 = arith.constant 0 : index
    %c0_35 = arith.constant 0 : index
    %36 = vector.load %arg7[%c0_33, %c0_34, %c0_35] : memref<12x2x24xf32, #tpu.memory_space<vmem>>, vector<12x2x24xf32>
    %37 = vector.shape_cast %36 : vector<12x2x24xf32> to vector<24x24xf32>
    %c0_36 = arith.constant 0 : index
    %c0_37 = arith.constant 0 : index
    %38 = vector.load %arg8[%c0_36, %c0_37] : memref<24x256xf32, #tpu.memory_space<vmem>>, vector<24x256xf32>
    %cst_38 = arith.constant dense<0.000000e+00> : vector<24x256xf32>
    %39 = tpu.matmul %37, %38, %cst_38 {dimension_numbers = #tpu.dot_dimension_numbers<[1], [0], [0], [1], [0, 0, 1, 1], [], []>} : vector<24x24xf32>, vector<24x256xf32>, vector<24x256xf32> -> vector<24x256xf32>
    %40 = vector.extract_strided_slice %39 {offsets = [0, 0], sizes = [2, 256], strides = [1, 1]} : vector<24x256xf32> to vector<2x256xf32>
    %41 = arith.mulf %40, %13 : vector<2x256xf32>
    %42 = vector.extract_strided_slice %39 {offsets = [2, 0], sizes = [2, 256], strides = [1, 1]} : vector<24x256xf32> to vector<2x256xf32>
    %43 = arith.mulf %42, %24 : vector<2x256xf32>
    %44 = arith.addf %41, %43 : vector<2x256xf32>
    %45 = vector.extract_strided_slice %39 {offsets = [4, 0], sizes = [2, 256], strides = [1, 1]} : vector<24x256xf32> to vector<2x256xf32>
    %46 = arith.mulf %45, %35 : vector<2x256xf32>
    %47 = arith.addf %44, %46 : vector<2x256xf32>
    %48 = vector.extract_strided_slice %39 {offsets = [6, 0], sizes = [2, 256], strides = [1, 1]} : vector<24x256xf32> to vector<2x256xf32>
    %49 = arith.addf %47, %48 : vector<2x256xf32>
    %c0_39 = arith.constant 0 : index
    %c0_40 = arith.constant 0 : index
    %c0_41 = arith.constant 0 : index
    %50 = vector.load %arg9[%c0_39, %c0_40, %c0_41] : memref<3x2x256xf32, #tpu.memory_space<vmem>>, vector<1x2x256xf32>
    %51 = vector.shape_cast %50 : vector<1x2x256xf32> to vector<2x256xf32>
    %52 = vector.shape_cast %49 : vector<2x256xf32> to vector<1x2x256xf32>
    tpu.vector_store %arg9[%c0_39, %c0_40, %c0_41], %52 {strides = array<i32>} : memref<3x2x256xf32, #tpu.memory_space<vmem>>, vector<1x2x256xf32>,
    %53 = vector.extract_strided_slice %39 {offsets = [8, 0], sizes = [2, 256], strides = [1, 1]} : vector<24x256xf32> to vector<2x256xf32>
    %54 = arith.mulf %53, %13 : vector<2x256xf32>
    %55 = vector.extract_strided_slice %39 {offsets = [10, 0], sizes = [2, 256], strides = [1, 1]} : vector<24x256xf32> to vector<2x256xf32>
    %56 = arith.mulf %55, %24 : vector<2x256xf32>
    %57 = arith.addf %54, %56 : vector<2x256xf32>
    %58 = vector.extract_strided_slice %39 {offsets = [12, 0], sizes = [2, 256], strides = [1, 1]} : vector<24x256xf32> to vector<2x256xf32>
    %59 = arith.mulf %58, %35 : vector<2x256xf32>
    %60 = arith.addf %57, %59 : vector<2x256xf32>
    %61 = vector.extract_strided_slice %39 {offsets = [14, 0], sizes = [2, 256], strides = [1, 1]} : vector<24x256xf32> to vector<2x256xf32>
    %62 = arith.addf %60, %61 : vector<2x256xf32>
    %c1_42 = arith.constant 1 : index
    %c0_43 = arith.constant 0 : index
    %c0_44 = arith.constant 0 : index
    %63 = vector.load %arg9[%c1_42, %c0_43, %c0_44] : memref<3x2x256xf32, #tpu.memory_space<vmem>>, vector<1x2x256xf32>
    %64 = vector.shape_cast %63 : vector<1x2x256xf32> to vector<2x256xf32>
    %65 = vector.shape_cast %62 : vector<2x256xf32> to vector<1x2x256xf32>
    tpu.vector_store %arg9[%c1_42, %c0_43, %c0_44], %65 {strides = array<i32>} : memref<3x2x256xf32, #tpu.memory_space<vmem>>, vector<1x2x256xf32>,
    %66 = vector.extract_strided_slice %39 {offsets = [16, 0], sizes = [2, 256], strides = [1, 1]} : vector<24x256xf32> to vector<2x256xf32>
    %67 = arith.mulf %66, %13 : vector<2x256xf32>
    %68 = vector.extract_strided_slice %39 {offsets = [18, 0], sizes = [2, 256], strides = [1, 1]} : vector<24x256xf32> to vector<2x256xf32>
    %69 = arith.mulf %68, %24 : vector<2x256xf32>
    %70 = arith.addf %67, %69 : vector<2x256xf32>
    %71 = vector.extract_strided_slice %39 {offsets = [20, 0], sizes = [2, 256], strides = [1, 1]} : vector<24x256xf32> to vector<2x256xf32>
    %72 = arith.mulf %71, %35 : vector<2x256xf32>
    %73 = arith.addf %70, %72 : vector<2x256xf32>
    %74 = vector.extract_strided_slice %39 {offsets = [22, 0], sizes = [2, 256], strides = [1, 1]} : vector<24x256xf32> to vector<2x256xf32>
    %75 = arith.addf %73, %74 : vector<2x256xf32>
    %c2_45 = arith.constant 2 : index
    %c0_46 = arith.constant 0 : index
    %c0_47 = arith.constant 0 : index
    %76 = vector.load %arg9[%c2_45, %c0_46, %c0_47] : memref<3x2x256xf32, #tpu.memory_space<vmem>>, vector<1x2x256xf32>
    %77 = vector.shape_cast %76 : vector<1x2x256xf32> to vector<2x256xf32>
    %78 = vector.shape_cast %75 : vector<2x256xf32> to vector<1x2x256xf32>
    tpu.vector_store %arg9[%c2_45, %c0_46, %c0_47], %78 {strides = array<i32>} : memref<3x2x256xf32, #tpu.memory_space<vmem>>, vector<1x2x256xf32>,
    return
  }
  func.func @transform_0(%arg0: i32, %arg1: i32) -> (i32, i32) {
    %c0_i32 = arith.constant 0 : i32
    %c0_i32_0 = arith.constant 0 : i32
    return %arg1, %c0_i32 : i32, i32
  }
  func.func @transform_1(%arg0: i32, %arg1: i32) -> (i32, i32) {
    %c0_i32 = arith.constant 0 : i32
    %c0_i32_0 = arith.constant 0 : i32
    return %arg1, %c0_i32 : i32, i32
  }
  func.func @transform_2(%arg0: i32, %arg1: i32) -> (i32, i32, i32) {
    %c0_i32 = arith.constant 0 : i32
    %c0_i32_0 = arith.constant 0 : i32
    %c0_i32_1 = arith.constant 0 : i32
    return %c0_i32, %c0_i32_0, %arg0 : i32, i32, i32
  }
  func.func @transform_3(%arg0: i32, %arg1: i32) -> (i32, i32, i32) {
    %c0_i32 = arith.constant 0 : i32
    %c0_i32_0 = arith.constant 0 : i32
    %c0_i32_1 = arith.constant 0 : i32
    return %c0_i32, %c0_i32_0, %arg0 : i32, i32, i32
  }
  func.func @transform_4(%arg0: i32, %arg1: i32) -> (i32, i32, i32) {
    %c0_i32 = arith.constant 0 : i32
    %c0_i32_0 = arith.constant 0 : i32
    %c0_i32_1 = arith.constant 0 : i32
    return %c0_i32, %c0_i32_0, %arg0 : i32, i32, i32
  }
  func.func @transform_5(%arg0: i32, %arg1: i32) -> (i32, i32, i32) {
    %c0_i32 = arith.constant 0 : i32
    %c0_i32_0 = arith.constant 0 : i32
    %c0_i32_1 = arith.constant 0 : i32
    return %c0_i32, %arg1, %c0_i32_0 : i32, i32, i32
  }
  func.func @transform_6(%arg0: i32, %arg1: i32) -> (i32, i32) {
    %c0_i32 = arith.constant 0 : i32
    %c0_i32_0 = arith.constant 0 : i32
    return %c0_i32, %arg0 : i32, i32
  }
  func.func @transform_7(%arg0: i32, %arg1: i32) -> (i32, i32, i32) {
    %c0_i32 = arith.constant 0 : i32
    %c0_i32_0 = arith.constant 0 : i32
    return %c0_i32, %arg1, %arg0 : i32, i32, i32
  }
}

</mosaic_0001>

<bundles_post_ra>
// kernel: tpu_custom_call.1
= control target key start
LH: loop header
LB: loop body
LE: loop exit
PB: predicated region body
PF: predicated region fallthrough
CT: control target
= control target key end

     0   :  { %12 = vsyncpa [#allocation3], 0  ;;  %s1866_s0 = inlined_call_operand.vmem [shape: f32[2,10], index: 0, kind: input, shape index: {}]   ;;  %s1867_s1 = inlined_call_operand.vmem [shape: f32[2,224], index: 1, kind: input, shape index: {}]   ;;  %s1868_s2 = inlined_call_operand.vmem [shape: f32[3,10,256], index: 2, kind: input, shape index: {}]   ;;  %s1869_s3 = inlined_call_operand.hbm [shape: bf16[3,224,256], index: 3, kind: input, shape index: {}]   ;;  %s1870_s4 = inlined_call_operand.vmem [shape: f32[3,1,256], index: 4, kind: input, shape index: {}]   ;;  %s1871_s5 = inlined_call_operand.vmem [shape: f32[12,2,24], index: 5, kind: input, shape index: {}]   ;;  %s1872_s6 = inlined_call_operand.vmem [shape: f32[24,256], index: 6, kind: input, shape index: {}]   ;;  %s1873_s7 = inlined_call_operand.hbm [shape: f32[3,2,256], index: 7, kind: output, shape index: {}]  }
   0x1   :  { %13 = vsyncpa [#allocation4], 0  ;;  %s1630_s24 = smov [#allocation2]   ;;  %s1582_s28 = scalar_lea.hbm %s1869_s3, 10752 }
   0x2   :  { %s25_s25 = sshll.u32 %s1630_s24, 4  ;;  %p1583_p0 = scmp.ne.s32.totalorder %s1869_s3, %s1582_s28  ;;  %s26_s25 = int_to_ptr.vmem [resolvable:$true] %s25_s25 }
   0x3   :  { %p1586_p1 = scmp.lt.u32.totalorder %s1582_s28, %s1869_s3 }
   0x5   :  { %p1588_p2 = pnand %p1586_p1, %p1583_p0 }
   0x7   :  { %1591 = shalt.err (!%p1588_p2)
}
   0x8   :  { %s1592_s10 = scalar_lea.vmem %s26_s25, 10752  ;;  %p1597_p4 = scmp.lt.s32.totalorder %s26_s25, %s26_s25 }
   0x9   :  { %p1593_p3 = scmp.ne.s32.totalorder %s26_s25, %s1592_s10  ;;  %p1598_p5 = scmp.lt.s32.totalorder %s1592_s10, %s1592_s10 }
   0xb   :  { %p1599_p6 = por %p1598_p5, %p1597_p4 }
   0xd   :  { %p1600_p7 = pnand %p1599_p6, %p1593_p3 }
   0xf   :  { %1603 = shalt.err (!%p1600_p7)
}
  0x10   :  { %s1631_s11 = smov 128   ;;  %s1632_s12 = smov 8  }
  0x11   :  { %31 = dma.hbm_to_vmem [thread:$0]  %s1869_s3, 10752, %s26_s25, [#allocation3], %s1631_s11, %s1631_s11, %s1632_s12  }
  0x12   :  { %1626 = dma.done.wait [#allocation3], 10752  }
  0x13   :  { %1627 = vsyncadd [#allocation3], 4294956544  ;;  %v1456_v0 = vld [vmem:[#allocation2 + $0x4] ss:$8 sps:$4 sm:$0xff]   ;;  %v1460_v2 = vld [vmem:[#allocation2] ss:$8 sps:$4 sm:$0xff]  }
  0x14   :  { %v1458_v1 = vld [vmem:[#allocation2 + $0xe4] ss:$8 sps:$4 sm:$0xff]   ;;  %233 = vmatprep.subr.bf16.mxu0 %v1456_v0  ;;  %v1461_v3 = vld [vmem:[#allocation2 + $0xe0] ss:$8 sps:$4 sm:$0xff]   ;;  %v1462_v4 = vld [vmem:[#allocation2 + $0x14] ss:$8 sps:$4 sm:$0xff]  }
  0x15   :  { %544 = vmatprep.subr.bf16.mxu1 %v1458_v1  ;;  %234 = vmatpush1.bf16.msra.mxu0 %v1460_v2  ;;  %v1464_v5 = vld [vmem:[#allocation2 + $0xf4] ss:$8 sps:$4 sm:$0xff]   ;;  %v1466_v6 = vld [vmem:[#allocation2 + $0x10] ss:$8 sps:$4 sm:$0xff]   ;;  %v1468_v8 = vld [vmem:[#allocation2 + $0x24] ss:$8 sps:$4 sm:$0xff]  }
  0x16   :  { %545 = vmatpush1.bf16.msra.mxu1 %v1461_v3  ;;  %235 = vmatprep.subr.bf16.mxu0 %v1462_v4  ;;  %v1467_v7 = vld [vmem:[#allocation2 + $0xf0] ss:$8 sps:$4 sm:$0xff]   ;;  %v1470_v9 = vld [vmem:[#allocation2 + $0x104] ss:$8 sps:$4 sm:$0xff]   ;;  %v1472_v10 = vld [vmem:[#allocation2 + $0x20] ss:$8 sps:$4 sm:$0xff]  }
  0x17   :  { %546 = vmatprep.subr.bf16.mxu1 %v1464_v5  ;;  %v1473_v11 = vld [vmem:[#allocation2 + $0x100] ss:$8 sps:$4 sm:$0xff]   ;;  %v1474_v12 = vld [vmem:[#allocation2 + $0x34] ss:$8 sps:$4 sm:$0xff]   ;;  %v1478_v14 = vld [vmem:[#allocation2 + $0x30] ss:$8 sps:$4 sm:$0xff]  }
  0x18   :  { %v1476_v13 = vld [vmem:[#allocation2 + $0x114] ss:$8 sps:$4 sm:$0xff]   ;;  %v1479_v15 = vld [vmem:[#allocation2 + $0x110] ss:$8 sps:$4 sm:$0xff]   ;;  %v1480_v16 = vld [vmem:[#allocation2 + $0x44] ss:$8 sps:$4 sm:$0xff]  }
  0x19   :  { %236 = vmatpush1.bf16.msra.mxu0 %v1466_v6  ;;  %v1482_v17 = vld [vmem:[#allocation2 + $0x124] ss:$8 sps:$4 sm:$0xff]   ;;  %v1484_v18 = vld [vmem:[#allocation2 + $0x40] ss:$8 sps:$4 sm:$0xff]   ;;  %v1486_v20 = vld [vmem:[#allocation2 + $0x54] ss:$8 sps:$4 sm:$0xff]  }
  0x1a   :  { %547 = vmatpush1.bf16.msra.mxu1 %v1467_v7  ;;  %237 = vmatprep.subr.bf16.mxu0 %v1468_v8  ;;  %v1485_v19 = vld [vmem:[#allocation2 + $0x120] ss:$8 sps:$4 sm:$0xff]   ;;  %v1488_v21 = vld [vmem:[#allocation2 + $0x134] ss:$8 sps:$4 sm:$0xff]   ;;  %v1490_v22 = vld [vmem:[#allocation2 + $0x50] ss:$8 sps:$4 sm:$0xff]  }
  0x1b   :  { %548 = vmatprep.subr.bf16.mxu1 %v1470_v9  ;;  %v1491_v23 = vld [vmem:[#allocation2 + $0x130] ss:$8 sps:$4 sm:$0xff]   ;;  %v1492_v24 = vld [vmem:[#allocation2 + $0x64] ss:$8 sps:$4 sm:$0xff]   ;;  %v1496_v26 = vld [vmem:[#allocation2 + $0x60] ss:$8 sps:$4 sm:$0xff]  }
  0x1c   :  { %v1494_v25 = vld [vmem:[#allocation2 + $0x144] ss:$8 sps:$4 sm:$0xff]   ;;  %v1497_v27 = vld [vmem:[#allocation2 + $0x140] ss:$8 sps:$4 sm:$0xff]   ;;  %v1498_v28 = vld [vmem:[#allocation2 + $0x74] ss:$8 sps:$4 sm:$0xff]  }
  0x1d   :  { %238 = vmatpush1.bf16.msra.mxu0 %v1472_v10  ;;  %v1500_v29 = vld [vmem:[#allocation2 + $0x154] ss:$8 sps:$4 sm:$0xff]   ;;  %v1502_v30 = vld [vmem:[#allocation2 + $0x70] ss:$8 sps:$4 sm:$0xff]   ;;  %v1504_v32 = vld [vmem:[#allocation2 + $0x84] ss:$8 sps:$4 sm:$0xff]   ;;  %v358_v10 = vlaneseq }
  0x1e   :  { %549 = vmatpush1.bf16.msra.mxu1 %v1473_v11  ;;  %239 = vmatprep.subr.bf16.mxu0 %v1474_v12  ;;  %v1503_v31 = vld [vmem:[#allocation2 + $0x150] ss:$8 sps:$4 sm:$0xff]   ;;  %v1506_v33 = vld [vmem:[#allocation2 + $0x164] ss:$8 sps:$4 sm:$0xff]   ;;  %v1508_v34 = vld [vmem:[#allocation2 + $0x80] ss:$8 sps:$4 sm:$0xff]  }
  0x1f   :  { %550 = vmatprep.subr.bf16.mxu1 %v1476_v13  ;;  %v1509_v35 = vld [vmem:[#allocation2 + $0x160] ss:$8 sps:$4 sm:$0xff]   ;;  %v1510_v36 = vld [vmem:[#allocation2 + $0x94] ss:$8 sps:$4 sm:$0xff]   ;;  %v1514_v38 = vld [vmem:[#allocation2 + $0x90] ss:$8 sps:$4 sm:$0xff]  }
  0x20   :  { %v1512_v37 = vld [vmem:[#allocation2 + $0x174] ss:$8 sps:$4 sm:$0xff]   ;;  %v1515_v39 = vld [vmem:[#allocation2 + $0x170] ss:$8 sps:$4 sm:$0xff]   ;;  %v1516_v40 = vld [vmem:[#allocation2 + $0xa4] ss:$8 sps:$4 sm:$0xff]  }
  0x21   :  { %240 = vmatpush1.bf16.msra.mxu0 %v1478_v14  ;;  %v1518_v41 = vld [vmem:[#allocation2 + $0x184] ss:$8 sps:$4 sm:$0xff]   ;;  %v1312_v42 = vld.sshfl [vmem:[%s1867_s1] sm:$0x33 pattern:$0x76325410] }
  0x22   :  { %551 = vmatpush1.bf16.msra.mxu1 %v1479_v15  ;;  %241 = vmatprep.subr.bf16.mxu0 %v1480_v16  ;;  %v52_v43 = vcombine.high %v1312_v42, %v1312_v42  ;;  %vm229_vm0 = vcmask 785408   ;;  %v1520_v44 = vld [vmem:[#allocation2 + $0xa0] ss:$8 sps:$4 sm:$0xff]   ;;  %v1522_v47 = vld [vmem:[#allocation2 + $0xb4] ss:$8 sps:$4 sm:$0xff]   ;;  %vm278_vm1 = vcmask 1041408   ;;  %v1716_v2 = vpack.c.bf16 %v1312_v42, %v1312_v42 }
  0x23   :  { %552 = vmatprep.subr.bf16.mxu1 %v1482_v17  ;;  %v1521_v45 = vld [vmem:[#allocation2 + $0x180] ss:$8 sps:$4 sm:$0xff]   ;;  %v1524_v48 = vld [vmem:[#allocation2 + $0x194] ss:$8 sps:$4 sm:$0xff]   ;;  %v1526_v49 = vld [vmem:[#allocation2 + $0xb0] ss:$8 sps:$4 sm:$0xff]  }
  0x24   :  { %v1694_v46 = vpack.c.bf16 %v52_v43, %v52_v43  ;;  %v1527_v50 = vld [vmem:[#allocation2 + $0x190] ss:$8 sps:$4 sm:$0xff]   ;;  %v1528_v51 = vld [vmem:[#allocation2 + $0xc4] ss:$8 sps:$4 sm:$0xff]   ;;  %v1532_v53 = vld [vmem:[#allocation2 + $0xc0] ss:$8 sps:$4 sm:$0xff]  }
  0x25   :  { %242 = vmatpush1.bf16.msra.mxu0 %v1484_v18  ;;  %v1530_v52 = vld [vmem:[#allocation2 + $0x1a4] ss:$8 sps:$4 sm:$0xff]   ;;  %v1533_v54 = vld [vmem:[#allocation2 + $0x1a0] ss:$8 sps:$4 sm:$0xff]   ;;  %v1534_v55 = vld [vmem:[#allocation2 + $0xd4] ss:$8 sps:$4 sm:$0xff]  }
  0x26   :  { %553 = vmatpush1.bf16.msra.mxu1 %v1485_v19  ;;  %243 = vmatprep.subr.bf16.mxu0 %v1486_v20  ;;  %v1536_v56 = vld [vmem:[#allocation2 + $0x1b4] ss:$8 sps:$4 sm:$0xff]   ;;  %v58_v57 = vld [vmem:[%s1868_s2 + $0x8] sm:$0xff]  ;;  %v60_v58 = vld [vmem:[%s1868_s2 + $0x18] sm:$0x3]  ;;  %vm1633_vm2 = vmmov 1  }
  0x27   :  { %554 = vmatprep.subr.bf16.mxu1 %v1488_v21  ;;  %1341 = vmatprep.mubr.msk.bf16.mxu0 %vm229_vm0, %v1694_v46  ;;  %v1538_v59 = vld [vmem:[#allocation2 + $0xd0] ss:$8 sps:$4 sm:$0xff]   ;;  %v1542_v61 = vld [vmem:[#allocation2 + $0x1c4] ss:$8 sps:$4 sm:$0xff]   ;;  %v1425_v62 = vpack.c.bf16 %v60_v58, %v58_v57  ;;  %vm1712_vm3 = vmpackc.low %vm278_vm1, %vm1633_vm2  ;;  %v1634_v11 = vmov 1983009808  }
  0x28   :  { %1377 = vmatprep.mubr.msk.bf16.mxu1 %vm229_vm0, %v1694_v46  ;;  %v1539_v60 = vld [vmem:[#allocation2 + $0x1b0] ss:$8 sps:$4 sm:$0xff]   ;;  %v57_v63 = vld [vmem:[%s1868_s2] sm:$0xff]  ;;  %v1346_v3 = vld [vmem:[%s1868_s2 + $0x28] sm:$0xff]  ;;  %v1017_v12 = vunpack.c.l.s4 %v1634_v11  ;;  %v1635_v14 = vmov 0.0   ;;  %vm274_vm4 = vcmask 80896  }
  0x29   :  { %244 = vmatpush1.bf16.msra.mxu0 %v1490_v22  ;;  %v59_v0 = vld [vmem:[%s1868_s2 + $0x10] sm:$0x3]  ;;  %v1348_v4 = vld [vmem:[%s1868_s2 + $0x38] sm:$0x3]  ;;  %v1540_v5 = vld [vmem:[#allocation2 + $0x1c0] ss:$8 sps:$4 sm:$0xff]  }
  0x2a   :  { %555 = vmatpush1.bf16.msra.mxu1 %v1491_v23  ;;  %245 = vmatprep.subr.bf16.mxu0 %v1492_v24  ;;  %v1428_v6 = vpack.c.bf16 %v59_v0, %v57_v63  ;;  %v1545_v7 = vld [vmem:[#allocation2 + $0x1d4] ss:$8 sps:$4 sm:$0xff]   ;;  %v1431_v8 = vpack.c.bf16 %v1348_v4, %v1346_v3  ;;  %v1543_v9 = vld [vmem:[#allocation2 + $0x1d0] ss:$8 sps:$4 sm:$0xff]   ;;  %v1345_v13 = vld [vmem:[%s1868_s2 + $0x20] sm:$0xff]  ;;  %v1756_v23 = vshrl.u32 %v358_v10, 7 }
  0x2b   :  { %556 = vmatprep.subr.bf16.mxu1 %v1494_v25  ;;  %v1347_v15 = vld [vmem:[%s1868_s2 + $0x30] sm:$0x3]  ;;  %v1548_v16 = vld [vmem:[#allocation2 + $0x1e4] ss:$8 sps:$4 sm:$0xff]   ;;  %v42_v17 = vld [vmem:[%s1866_s0] sm:$0x3]  ;;  %v1018_v25 = vunpack.c.0.s8 %v1017_v12 }
  0x2c   :  { %v1546_v18 = vld [vmem:[#allocation2 + $0x1e0] ss:$8 sps:$4 sm:$0xff]   ;;  %v1385_v20 = vld [vmem:[%s1868_s2 + $0x58] sm:$0x3]  ;;  %v1384_v22 = vld [vmem:[%s1868_s2 + $0x50] sm:$0x3] }
  0x2d   :  { %246 = vmatpush1.bf16.msra.mxu0 %v1496_v26  ;;  %v1383_v19 = vld [vmem:[%s1868_s2 + $0x48] sm:$0xff]  ;;  %v1382_v21 = vld [vmem:[%s1868_s2 + $0x40] sm:$0xff]  ;;  %v1434_v26 = vpack.c.bf16 %v1347_v15, %v1345_v13  ;;  %v994_v57 = vld [vmem:[%s1871_s5 + $0x14] sm:$0x3]  ;;  %vm1065_vm5 = vcmask 195584  }
  0x2e   :  { %557 = vmatpush1.bf16.msra.mxu1 %v1497_v27  ;;  %247 = vmatprep.subr.bf16.mxu0 %v1498_v28  ;;  %v984_v24 = vld [vmem:[%s1871_s5] sm:$0x3]  ;;  %v1551_v27 = vld [vmem:[#allocation2 + $0x1f4] ss:$8 sps:$4 sm:$0xff]   ;;  %v985_v28 = vld [vmem:[%s1871_s5 + $0x2] sm:$0x3] }
  0x2f   :  { %558 = vmatprep.subr.bf16.mxu1 %v1500_v29  ;;  %v1437_v29 = vpack.c.bf16 %v1385_v20, %v1383_v19  ;;  %v988_v42 = vld [vmem:[%s1871_s5 + $0x8] sm:$0x3]  ;;  %v989_v43 = vld [vmem:[%s1871_s5 + $0xa] sm:$0x3]  ;;  %v995_v58 = vld [vmem:[%s1871_s5 + $0x16] sm:$0x3] }
  0x30   :  { %v1560_v63 = vld [vmem:[#allocation2 + $0x224] ss:$8 sps:$4 sm:$0xff]   ;;  %v1049_v3 = vcombine.low %v994_v57, %v995_v58  ;;  %v1558_v4 = vld [vmem:[#allocation2 + $0x220] ss:$8 sps:$4 sm:$0xff]   ;;  %v1569_v13 = vld [vmem:[#allocation2 + $0x254] ss:$8 sps:$4 sm:$0xff]  }
  0x31   :  { %248 = vmatpush1.bf16.msra.mxu0 %v1502_v30  ;;  %v986_v30 = vld [vmem:[%s1871_s5 + $0x4] sm:$0x3]  ;;  %v1564_v12 = vld [vmem:[#allocation2 + $0x240] ss:$8 sps:$4 sm:$0xff]   ;;  %v1567_v15 = vld [vmem:[#allocation2 + $0x250] ss:$8 sps:$4 sm:$0xff]  }
  0x32   :  { %559 = vmatpush1.bf16.msra.mxu1 %v1503_v31  ;;  %249 = vmatprep.subr.bf16.mxu0 %v1504_v32  ;;  %v987_v31 = vld [vmem:[%s1871_s5 + $0x6] sm:$0x3]  ;;  %v997_v32 = vld [vmem:[%s1872_s6 + $0x8] sm:$0xff]  ;;  %v1573_v19 = vld [vmem:[#allocation2 + $0x270] ss:$8 sps:$4 sm:$0xff]  }
  0x33   :  { %560 = vmatprep.subr.bf16.mxu1 %v1506_v33  ;;  %v999_v33 = vld [vmem:[%s1872_s6 + $0x18] sm:$0xff]  ;;  %v1566_v11 = vld [vmem:[#allocation2 + $0x244] ss:$8 sps:$4 sm:$0xff]  }
  0x34   :  { %v1578_v20 = vld [vmem:[#allocation2 + $0x284] ss:$8 sps:$4 sm:$0xff]  }
  0x35   :  { %250 = vmatpush1.bf16.msra.mxu0 %v1508_v34  ;;  %v1021_v34 = vsub.s32 %v1018_v25, %v1756_v23 }
  0x36   :  { %561 = vmatpush1.bf16.msra.mxu1 %v1509_v35  ;;  %251 = vmatprep.subr.bf16.mxu0 %v1510_v36  ;;  %v1549_v35 = vld [vmem:[#allocation2 + $0x1f0] ss:$8 sps:$4 sm:$0xff]   ;;  %v1440_v36 = vpack.c.bf16 %v1384_v22, %v1382_v21  ;;  %v1581_v21 = vld [vmem:[#allocation2 + $0x294] ss:$8 sps:$4 sm:$0xff]  }
  0x37   :  { %562 = vmatprep.subr.bf16.mxu1 %v1512_v37  ;;  %v996_v37 = vld [vmem:[%s1872_s6] sm:$0xff]  ;;  %v1579_v22 = vld [vmem:[#allocation2 + $0x290] ss:$8 sps:$4 sm:$0xff]  }
  0x39   :  { %252 = vmatpush1.bf16.msra.mxu0 %v1514_v38  ;;  %v998_v38 = vld [vmem:[%s1872_s6 + $0x10] sm:$0xff] }
  0x3a   :  { %563 = vmatpush1.bf16.msra.mxu1 %v1515_v39  ;;  %253 = vmatprep.subr.bf16.mxu0 %v1516_v40  ;;  %v1014_v39 = vcombine.low %v984_v24, %v985_v28  ;;  %v1015_v40 = vcombine.low %v986_v30, %v987_v31 }
  0x3b   :  { %564 = vmatprep.subr.bf16.mxu1 %v1518_v41  ;;  %v1443_v41 = vpack.c.bf16 %v999_v33, %v997_v32 }
  0x3d   :  { %254 = vmatpush1.bf16.msra.mxu0 %v1520_v44  ;;  %v1554_v44 = vld [vmem:[#allocation2 + $0x204] ss:$8 sps:$4 sm:$0xff]  }
  0x3e   :  { %565 = vmatpush1.bf16.msra.mxu1 %v1521_v45  ;;  %255 = vmatprep.subr.bf16.mxu0 %v1522_v47  ;;  %v990_v45 = vld [vmem:[%s1871_s5 + $0xc] sm:$0x3]  ;;  %v1445_v47 = vpack.c.bf16 %v998_v38, %v996_v37  ;;  %v364_v37 = vsub.s32 1, %v1756_v23  ;;  %v356_v38 = vld [vmem:[%s1870_s4] sm:$0x3] }
  0x3f   :  { %566 = vmatprep.subr.bf16.mxu1 %v1524_v48  ;;  %v1552_v48 = vld [vmem:[#allocation2 + $0x200] ss:$8 sps:$4 sm:$0xff]  }
  0x41   :  { %256 = vmatpush1.bf16.msra.mxu0 %v1526_v49  ;;  %v1022_v49 = vrot.slane %v1014_v39, %v1021_v34 }
  0x42   :  { %567 = vmatpush1.bf16.msra.mxu1 %v1527_v50  ;;  %257 = vmatprep.subr.bf16.mxu0 %v1528_v51  ;;  %v1029_v50 = vrot.slane %v1015_v40, %v1021_v34  ;;  %v1031_v51 = vcombine.low %v988_v42, %v989_v43 }
  0x43   :  { %568 = vmatprep.subr.bf16.mxu1 %v1530_v52  ;;  %v1001_v52 = vld [vmem:[%s1872_s6 + $0x28] sm:$0xff] }
  0x45   :  { %258 = vmatpush1.bf16.msra.mxu0 %v1532_v53  ;;  %v1557_v53 = vld [vmem:[#allocation2 + $0x214] ss:$8 sps:$4 sm:$0xff]  }
  0x46   :  { %569 = vmatpush1.bf16.msra.mxu1 %v1533_v54  ;;  %259 = vmatprep.subr.bf16.mxu0 %v1534_v55  ;;  %v992_v55 = vld [vmem:[%s1871_s5 + $0x10] sm:$0x3] }
  0x47   :  { %570 = vmatprep.subr.bf16.mxu1 %v1536_v56  ;;  %v993_v56 = vld [vmem:[%s1871_s5 + $0x12] sm:$0x3] }
  0x48   :  { %v1048_v1 = vcombine.low %v992_v55, %v993_v56 }
  0x49   :  { %260 = vmatpush1.bf16.msra.mxu0 %v1538_v59  ;;  %v1555_v59 = vld [vmem:[#allocation2 + $0x210] ss:$8 sps:$4 sm:$0xff]  }
  0x4a   :  { %571 = vmatpush1.bf16.msra.mxu1 %v1539_v60  ;;  %1427 = vmatprep.subr.msk.bf16.mxu0 %vm1712_vm3, %v1425_v62  ;;  %v1030_v60 = vcombine.low %v1022_v49, %v1029_v50  ;;  %v1000_v62 = vld [vmem:[%s1872_s6 + $0x20] sm:$0xff] }
  0x4b   :  { %851 = vmatprep.subr.bf16.mxu1 %v1542_v61  ;;  %v1039_v61 = vrot.slane %v1031_v51, %v1021_v34 }
  0x4c   :  { %266 = vmatmul.mubr.bf16.vlgmr.msra.gmra.mrb[0].mxu0 %v1716_v2 }
  0x4d   :  { %577 = vmatmul.mubr.bf16.vlgmr.msra.gmra.mrb[0].mxu1 %v1716_v2  ;;  %1430 = vmatpush1.bf16.msk.msra.mxu0 %vm1712_vm3, %v1428_v6  ;;  %v1563_v6 = vld [vmem:[#allocation2 + $0x234] ss:$8 sps:$4 sm:$0xff]  }
  0x4e   :  { %852 = vmatpush1.bf16.msra.mxu1 %v1540_v5  ;;  %349 = vmatprep.mubr.f32.mxu0 %v1635_v14 }
  0x4f   :  { %853 = vmatprep.subr.bf16.mxu1 %v1545_v7  ;;  %1433 = vmatprep.subr.msk.bf16.mxu0 %vm1712_vm3, %v1431_v8  ;;  %v1056_v7 = vrot.slane %v1048_v1, %v1021_v34  ;;  %v1063_v8 = vrot.slane %v1049_v3, %v1021_v34 }
  0x50   :  { %1414 = vmatprep.mubr.msk.bf16.mxu1 %vm229_vm0, %v1694_v46  ;;  %v991_v46 = vld [vmem:[%s1871_s5 + $0xe] sm:$0x3] }
  0x51   :  { %v1032_v54 = vcombine.low %v990_v45, %v991_v46  ;;  %v1064_v10 = vcombine.low %v1056_v7, %v1063_v8  ;;  %v365_v46 = vrot.slane %v356_v38, %v364_v37 }
  0x52   :  { %854 = vmatpush1.bf16.msra.mxu1 %v1543_v9  ;;  %v1561_v9 = vld [vmem:[#allocation2 + $0x230] ss:$8 sps:$4 sm:$0xff]  }
  0x53   :  { %855 = vmatprep.subr.bf16.mxu1 %v1548_v16  ;;  %v1046_v0 = vrot.slane %v1032_v54, %v1021_v34  ;;  %v1572_v16 = vld [vmem:[#allocation2 + $0x264] ss:$8 sps:$4 sm:$0xff]   ;;  %v360_v34 = vsub.s32 0, %v1756_v23 }
  0x54   :  { %1344 = vmatmul.mubr.msk.f32.vlgmr.msra.gmra.mrb[4].mxu0 %vm274_vm4, %v42_v17 }
  0x55   :  { %1436 = vmatpush1.bf16.msk.msra.mxu0 %vm1712_vm3, %v1434_v26  ;;  %655 = vmatprep.mubr.f32.mxu0 %v1635_v14  ;;  %v1047_v5 = vcombine.low %v1039_v61, %v1046_v0  ;;  %v361_v45 = vrot.slane %v356_v38, %v360_v34 }
  0x56   :  { %856 = vmatpush1.bf16.msra.mxu1 %v1546_v18  ;;  %1439 = vmatprep.subr.msk.bf16.mxu0 %vm1712_vm3, %v1437_v29  ;;  %v1575_v18 = vld [vmem:[#allocation2 + $0x274] ss:$8 sps:$4 sm:$0xff]  }
  0x57   :  { %857 = vmatprep.subr.bf16.mxu1 %v1551_v27 }
  0x58   :  { %1380 = vmatmul.mubr.msk.f32.vlgmr.msra.gmra.mrb[6].mxu0 %vm274_vm4, %v42_v17 }
  0x59   :  { %1442 = vmatpush1.bf16.msk.msra.mxu0 %vm1712_vm3, %v1440_v36  ;;  %962 = vmatprep.mubr.f32.mxu0 %v1635_v14 }
  0x5a   :  { %858 = vmatpush1.bf16.msra.mxu1 %v1549_v35  ;;  %1444 = vmatprep.subr.bf16.mxu0 %v1443_v41 }
  0x5b   :  { %859 = vmatprep.subr.bf16.mxu1 %v1554_v44 }
  0x5c   :  { %1417 = vmatmul.mubr.msk.f32.vlgmr.msra.gmra.mrb[8].mxu0 %vm274_vm4, %v42_v17  ;;  %v1570_v17 = vld [vmem:[#allocation2 + $0x260] ss:$8 sps:$4 sm:$0xff]  }
  0x5d   :  { %1446 = vmatpush1.bf16.msra.mxu0 %v1445_v47  ;;  %1136 = vmatprep.mubr.f32.mxu0 %v1635_v14 }
  0x5e   :  { %860 = vmatpush1.bf16.msra.mxu1 %v1552_v48  ;;  %1076 = vmatprep.subr.mxu0 %v1001_v52 }
  0x5f   :  { %861 = vmatprep.subr.bf16.mxu1 %v1557_v53 }
  0x61   :  { %1077 = vmatpush1.msra.mxu0 %v1000_v62 }
  0x62   :  { %862 = vmatpush1.bf16.msra.mxu1 %v1555_v59  ;;  %1419 = vmatmul.mubr.msk.f32.vlgmr.msra.gmra.mrb[10].mxu0 %vm1065_vm5, %v1030_v60 }
  0x63   :  { %863 = vmatprep.subr.bf16.mxu1 %v1560_v63  ;;  %1142 = vmatprep.mubr.f32.mxu0 %v1635_v14 }
  0x66   :  { %864 = vmatpush1.bf16.msra.mxu1 %v1558_v4  ;;  %1420 = vmatmul.mubr.msk.f32.gmra.mrb[12].mxu0 %vm1065_vm5, %v1047_v5 }
  0x67   :  { %865 = vmatprep.subr.bf16.mxu1 %v1563_v6  ;;  %1148 = vmatprep.mubr.f32.mxu0 %v1635_v14  ;;  %v1576_v14 = vld [vmem:[#allocation2 + $0x280] ss:$8 sps:$4 sm:$0xff]  }
  0x6a   :  { %866 = vmatpush1.bf16.msra.mxu1 %v1561_v9  ;;  %1421 = vmatmul.mubr.msk.f32.gmra.mrb[14].mxu0 %vm1065_vm5, %v1064_v10 }
  0x6b   :  { %867 = vmatprep.subr.bf16.mxu1 %v1566_v11 }
  0x6e   :  { %868 = vmatpush1.bf16.msra.mxu1 %v1564_v12 }
  0x6f   :  { %869 = vmatprep.subr.bf16.mxu1 %v1569_v13 }
  0x72   :  { %870 = vmatpush1.bf16.msra.mxu1 %v1567_v15 }
  0x73   :  { %871 = vmatprep.subr.bf16.mxu1 %v1572_v16 }
  0x76   :  { %872 = vmatpush1.bf16.msra.mxu1 %v1570_v17 }
  0x77   :  { %873 = vmatprep.subr.bf16.mxu1 %v1575_v18 }
  0x7a   :  { %874 = vmatpush1.bf16.msra.mxu1 %v1573_v19 }
  0x7b   :  { %875 = vmatprep.subr.bf16.mxu1 %v1578_v20 }
  0x7e   :  { %876 = vmatpush1.bf16.msra.mxu1 %v1576_v14 }
  0x7f   :  { %877 = vmatprep.subr.bf16.mxu1 %v1581_v21  ;;  %v1418_v21 = vld [vmem:[%s1870_s4 + $0x4] sm:$0x3] }
  0x82   :  { %878 = vmatpush1.bf16.msra.mxu1 %v1579_v22  ;;  %v975_v22 = vrot.slane %v1418_v21, %v360_v34 }
  0x85   :  { %884 = vmatmul.mubr.bf16.vlgmr.msra.gmra.mrb[4].mxu1 %v1716_v2  ;;  %v1381_v2 = vld [vmem:[%s1870_s4 + $0x2] sm:$0x3]  ;;  %s1636_s4 = smov [#allocation5]  }
  0x86   :  { %v668_v41 = vrot.slane %v1381_v2, %v360_v34  ;;  %v672_v44 = vrot.slane %v1381_v2, %v364_v37  ;;  %s1300_s27 = sshll.u32 %s1636_s4, 4  ;;  %s1301_s27 = int_to_ptr.vmem [resolvable:$true] %s1300_s27 }
  0x87   :  { %s1604_s28 = scalar_lea.vmem %s1301_s27, 192  ;;  %p1609_p9 = scmp.lt.s32.totalorder %s1301_s27, %s1301_s27 }
  0x88   :  { %p1605_p8 = scmp.ne.s32.totalorder %s1301_s27, %s1604_s28  ;;  %p1610_p10 = scmp.lt.s32.totalorder %s1604_s28, %s1604_s28 }
  0x8a   :  { %p1611_p11 = por %p1610_p10, %p1609_p9 }
  0x8c   :  { %p1612_p12 = pnand %p1611_p11, %p1605_p8 }
 0x11f   :  { %v267_v25 = vpop.f32.mrb[0].mxu0 }
 0x120   :  { %v578_v24 = vpop.f32.mrb[0].mxu1  ;;  %v269_v27 = vpop.f32.mrb[1].mxu0 }
 0x121   :  { %v580_v26 = vpop.f32.mrb[1].mxu1  ;;  %v271_v29 = vpop.f32.mrb[2].mxu0 }
 0x122   :  { %v582_v28 = vpop.f32.mrb[2].mxu1  ;;  %v272_v31 = vpop.f32.mrb[3].mxu0 }
 0x123   :  { %v583_v30 = vpop.f32.mrb[3].mxu1 }
 0x127   :  { %v351_v32 = vpop.f32.mrb[4].mxu0 }
 0x128   :  { %v352_v33 = vadd.f32 %v351_v32, %v267_v25  ;;  %v353_v35 = vpop.f32.mrb[5].mxu0  ;;  %v979_v25 = vrot.slane %v1418_v21, %v364_v37 }
 0x129   :  { %v354_v36 = vadd.f32 %v353_v35, %v269_v27 }
 0x12a   :  { %v368_v50 = vadd.f32 %v361_v45, %v352_v33 }
 0x12b   :  { %v657_v39 = vpop.f32.mrb[6].mxu0  ;;  %v369_v51 = vadd.f32 %v365_v46, %v354_v36 }
 0x12c   :  { %v658_v40 = vadd.f32 %v657_v39, %v578_v24  ;;  %v659_v42 = vpop.f32.mrb[7].mxu0 }
 0x12d   :  { %v660_v43 = vadd.f32 %v659_v42, %v580_v26 }
 0x12e   :  { %v675_v48 = vadd.f32 %v668_v41, %v658_v40 }
 0x12f   :  { %v964_v47 = vpop.f32.mrb[8].mxu0  ;;  %v676_v23 = vadd.f32 %v672_v44, %v660_v43 }
 0x130   :  { %v966_v49 = vpop.f32.mrb[9].mxu0  ;;  %v1159_v52 = vrot.slane %v675_v48, 6 }
 0x131   :  { %v1160_v53 = vrot.slane %v676_v23, 6 }
 0x135   :  { %v1839_v54 = vpop.f32.mrb[10].mxu0 }
 0x136   :  { %v1155_v55 = vmul.f32 %v1839_v54, %v368_v50  ;;  %v1163_v56 = vmul.f32 %v1159_v52, %v1839_v54  ;;  %v1843_v57 = vpop.f32.mrb[11].mxu0  ;;  %v1191_v36 = vrot.slane %v1839_v54, 6 }
 0x137   :  { %v1156_v58 = vmul.f32 %v1843_v57, %v369_v51  ;;  %v1164_v59 = vmul.f32 %v1160_v53, %v1843_v57  ;;  %v1192_v40 = vrot.slane %v1843_v57, 6 }
 0x138   :  { %v1167_v60 = vrot.slane %v1163_v56, 2 }
 0x139   :  { %v1168_v61 = vrot.slane %v1164_v59, 2  ;;  %v1144_v62 = vpop.f32.mrb[12].mxu0 }
 0x13a   :  { %v1171_v63 = vadd.f32 %v1167_v60, %v1155_v55  ;;  %v1209_v0 = vmul.f32 %v1144_v62, %v368_v50  ;;  %v1211_v1 = vmul.f32 %v1159_v52, %v1144_v62  ;;  %v1146_v3 = vpop.f32.mrb[13].mxu0  ;;  %v1233_v42 = vrot.slane %v1144_v62, 6 }
 0x13b   :  { %v1172_v4 = vadd.f32 %v1168_v61, %v1156_v58  ;;  %v1210_v5 = vmul.f32 %v1146_v3, %v369_v51  ;;  %v1212_v6 = vmul.f32 %v1160_v53, %v1146_v3  ;;  %v1234_v46 = vrot.slane %v1146_v3, 6 }
 0x13c   :  { %v1215_v7 = vrot.slane %v1211_v1, 2 }
 0x13d   :  { %v1216_v8 = vrot.slane %v1212_v6, 2  ;;  %v1150_v9 = vpop.f32.mrb[14].mxu0 }
 0x13e   :  { %v1219_v10 = vadd.f32 %v1215_v7, %v1209_v0  ;;  %v1252_v11 = vmul.f32 %v1150_v9, %v368_v50  ;;  %v1254_v12 = vmul.f32 %v1159_v52, %v1150_v9  ;;  %v1152_v13 = vpop.f32.mrb[15].mxu0  ;;  %v1276_v23 = vrot.slane %v1150_v9, 6 }
 0x13f   :  { %v1220_v15 = vadd.f32 %v1216_v8, %v1210_v5  ;;  %v1253_v16 = vmul.f32 %v1152_v13, %v369_v51  ;;  %v1255_v17 = vmul.f32 %v1160_v53, %v1152_v13  ;;  %v1277_v53 = vrot.slane %v1152_v13, 6 }
 0x140   :  { %v1258_v18 = vrot.slane %v1254_v12, 2 }
 0x141   :  { %v1259_v19 = vrot.slane %v1255_v17, 2 }
 0x142   :  { %v1262_v20 = vadd.f32 %v1258_v18, %v1252_v11 }
 0x143   :  { %v1263_v14 = vadd.f32 %v1259_v19, %v1253_v16 }
 0x158   :  { %v885_v24 = vpop.f32.mrb[4].mxu1 }
 0x159   :  { %v965_v26 = vadd.f32 %v964_v47, %v885_v24  ;;  %v887_v27 = vpop.f32.mrb[5].mxu1 }
 0x15a   :  { %v967_v28 = vadd.f32 %v966_v49, %v887_v27  ;;  %v889_v29 = vpop.f32.mrb[6].mxu1 }
 0x15b   :  { %v982_v30 = vadd.f32 %v975_v22, %v965_v26  ;;  %v890_v31 = vpop.f32.mrb[7].mxu1 }
 0x15c   :  { %v983_v32 = vadd.f32 %v979_v25, %v967_v28 }
 0x15d   :  { %v1175_v33 = vrot.slane %v982_v30, 4 }
 0x15e   :  { %v1176_v35 = vrot.slane %v983_v32, 4 }
 0x15f   :  { %v1179_v2 = vmul.f32 %v1175_v33, %v1839_v54  ;;  %v1221_v38 = vmul.f32 %v1175_v33, %v1144_v62  ;;  %v1264_v39 = vmul.f32 %v1175_v33, %v1150_v9 }
 0x160   :  { %v1180_v34 = vmul.f32 %v1176_v35, %v1843_v57  ;;  %v1222_v37 = vmul.f32 %v1176_v35, %v1146_v3  ;;  %v1265_v41 = vmul.f32 %v1176_v35, %v1152_v13 }
 0x161   :  { %v1183_v43 = vrot.slane %v1179_v2, 4  ;;  %v1225_v44 = vrot.slane %v1221_v38, 4  ;;  %v1268_v45 = vrot.slane %v1264_v39, 4 }
 0x162   :  { %v1184_v47 = vrot.slane %v1180_v34, 4  ;;  %v1226_v48 = vrot.slane %v1222_v37, 4  ;;  %v1269_v49 = vrot.slane %v1265_v41, 4 }
 0x163   :  { %v1187_v50 = vadd.f32 %v1183_v43, %v1171_v63  ;;  %v1229_v51 = vadd.f32 %v1225_v44, %v1219_v10  ;;  %v1272_v52 = vadd.f32 %v1268_v45, %v1262_v20 }
 0x164   :  { %v1188_v54 = vadd.f32 %v1184_v47, %v1172_v4  ;;  %v1230_v55 = vadd.f32 %v1226_v48, %v1220_v15  ;;  %v1273_v56 = vadd.f32 %v1269_v49, %v1263_v14 }
 0x165   :  { %v1195_v58 = vadd.f32 %v1191_v36, %v1187_v50  ;;  %v1237_v57 = vadd.f32 %v1233_v42, %v1229_v51  ;;  %v1280_v59 = vadd.f32 %v1276_v23, %v1272_v52 }
 0x166   :  { %v1196_v60 = vadd.f32 %v1192_v40, %v1188_v54  ;;  %v1238_v61 = vadd.f32 %v1234_v46, %v1230_v55  ;;  %v1281_v62 = vadd.f32 %v1277_v53, %v1273_v56 }
 0x168   :  { %v1199_v0 = vcombine.low %v1195_v58, %v1196_v60  ;;  %v1241_v1 = vcombine.low %v1237_v57, %v1238_v61  ;;  %v1284_v3 = vcombine.low %v1280_v59, %v1281_v62 }
 0x16a   :  { %1422 = vst.sshfl [vmem:[#allocation5] sm:$0x33 pattern:$0x76325410] %v1199_v0 }
 0x16b   :  { %1423 = vst.sshfl [vmem:[#allocation5 + $0x4] sm:$0x33 pattern:$0x76325410] %v1241_v1 }
 0x16c   :  { %1424 = vst.sshfl [vmem:[#allocation5 + $0x8] sm:$0x33 pattern:$0x76325410] %v1284_v3 }
 0x16d   :  { %1615 = shalt.err (!%p1612_p12)
}
 0x16e   :  { %s1616_s8 = scalar_lea.hbm %s1873_s7, 192 }
 0x16f   :  { %p1617_p13 = scmp.ne.s32.totalorder %s1873_s7, %s1616_s8  ;;  %p1620_p0 = scmp.lt.u32.totalorder %s1616_s8, %s1873_s7 }
 0x171   :  { %p1622_p1 = pnand %p1620_p0, %p1617_p13 }
 0x173   :  { %1625 = shalt.err (!%p1622_p1)
}
 0x174   :  { %s1637_s13 = smov 64   ;;  %s1638_s14 = smov 4  }
 0x175   :  { %1306 = dma.vmem_to_hbm [thread:$0]  %s1301_s27, 192, %s1873_s7, [#allocation4], %s1637_s13, %s1637_s13, %s1638_s14  }
 0x176   :  { %1628 = dma.done.wait [#allocation4], 192  }
 0x177   :  { %1629 = vsyncadd [#allocation4], 4294967104 }
 0x178   :  { %1310 = vsyncpa [#allocation3], 1 }
 0x179   :  { %1311 = vsyncpa [#allocation4], 1 }

</bundles_post_ra>
